<compile_context>
chip_gen: v7x
topology: tpu7x:2x2x1
jax: 0.10.0
libtpu: 0.0.40
codegen_flags: <defaults>
</compile_context>

<pallas_src>
import functools

import jax
import jax.numpy as jnp
from jax.experimental import pallas as pl
from jax.experimental.pallas import tpu as pltpu

N_QUBITS = 10
LANES = 128      # lane width of a vreg


def _next_pow2(n: int) -> int:
    p = 1
    while p < n:
        p *= 2
    return p


def _make_expval_kernel(n_qubits: int):
    """Kernel computing <Z_k> = prod_{j<=k} cos(theta_j) with theta laid out along lanes."""
    # Mask-free scan validity: contamination from real lanes spreads at most
    # n_qubits - 1 + (next_pow2(n_qubits) - 1) lanes to the right, and the wrapped-around
    # source lanes for lane k < shift live in [LANES - shift, LANES). They must stay at
    # cos(0) = 1 for the unmasked multiply to be a no-op on those lanes.
    p = _next_pow2(n_qubits)
    assert n_qubits + p - 2 < LANES - p // 2, (
        "mask-free prefix-product scan requires padded wrap lanes to stay uncontaminated"
    )

    def kernel(theta_ref, out_ref):
        # theta_ref: (1, LANES) -- lane j holds theta_j; padded lanes are 0 (cos = 1)
        # out_ref  : (1, LANES) -- lane k holds <Z_k> for k < n_qubits
        # One full-row transcendental push for all cosines (single EUP slot).
        cum = jnp.cos(theta_ref[...])

        # Hillis-Steele prefix product along lanes (log2 depth). Rolls run on the XLU slot;
        # no lane mask needed: wrapped-in lanes hold exactly 1.0 (see assert above).
        shift = 1
        while shift < n_qubits:
            cum = cum * pltpu.roll(cum, shift=shift, axis=1)   # rolled[k] = cum[k - shift]
            shift *= 2

        out_ref[...] = cum.astype(out_ref.dtype)

    return kernel


@functools.partial(jax.jit, static_argnames=())
def quantum_latent_compressor(x, params):
    """Forward pass: returns (batch, n_qubits) float32, rows all equal to the circuit expvals."""
    batch = x.shape[0]
    n_qubits = params.shape[0]
    assert n_qubits <= LANES, "kernel assumes n_qubits fits in one lane row"

    # Layout glue only: theta_j into lane j of a single 128-lane row (padded lanes = 0 -> cos=1).
    theta_row = jnp.pad(params.astype(jnp.float32), (0, LANES - n_qubits)).reshape(1, LANES)

    expvals_row = pl.pallas_call(
        _make_expval_kernel(n_qubits),
        out_shape=jax.ShapeDtypeStruct((1, LANES), jnp.float32),
        in_specs=[pl.BlockSpec(memory_space=pltpu.MemorySpace.VMEM)],
        out_specs=pl.BlockSpec(memory_space=pltpu.MemorySpace.VMEM),
        cost_estimate=pl.CostEstimate(
            flops=2048, transcendentals=LANES, bytes_accessed=1024
        ),
    )(theta_row)

    # Batch broadcast in XLA (fuses into downstream consumers); kernel output is batch-free.
    zexp = expvals_row[0, :n_qubits]
    return jnp.broadcast_to(zexp[None, :], (batch, n_qubits))


def _reference(x, params):
    # Pure-JAX closed form of the lightning.qubit simulation of this circuit.
    zexp = jnp.cumprod(jnp.cos(params.astype(jnp.float32)))
    return jnp.broadcast_to(zexp[None, :], (x.shape[0], params.shape[0]))


if __name__ == "__main__":
    key = jax.random.PRNGKey(0)
    k_params, k_x = jax.random.split(key)

    # nn.Parameter(torch.randn(n_qubits)) -> deterministic normal init here.
    params = jax.random.normal(k_params, (N_QUBITS,), dtype=jnp.float32)
    # Input latent: only its batch dimension is consumed by the forward pass.
    x = jax.random.normal(k_x, (2, 32), dtype=jnp.float32)

    out = quantum_latent_compressor(x, params)
    out = jax.block_until_ready(out)

    ref = _reference(x, params)
    assert out.shape == (2, N_QUBITS), out.shape
    assert out.dtype == jnp.float32, out.dtype
    # Log-depth prefix product reorders the multiplications vs jnp.cumprod (few-ulp difference).
    if not jnp.allclose(out, ref, rtol=1e-4, atol=1e-5):
        raise AssertionError(f"kernel/reference mismatch:\n{out}\n{ref}")

    # TODO(synk): the PennyLane qnode (generic statevector simulation) has no Pallas
    # equivalent; this kernel uses the exact analytic expectation values of this circuit.
    print("KERNEL_OK")
</pallas_src>

<mosaic_0001>
module attributes {stable_mosaic.version = 11 : i64} {
  func.func @kernel(%arg0: memref<1x128xf32, #tpu.memory_space<vmem>>, %arg1: memref<1x128xf32, #tpu.memory_space<vmem>>) attributes {dimension_semantics = [], scalar_prefetch = 0 : i64, scratch_operands = 0 : i64, tpu.core_type = #tpu.core_type<tc>} {
    %c0 = arith.constant 0 : index
    %c0_0 = arith.constant 0 : index
    %0 = vector.load %arg0[%c0, %c0_0] : memref<1x128xf32, #tpu.memory_space<vmem>>, vector<1x128xf32>
    %1 = math.cos %0 : vector<1x128xf32>
    %c1_i32 = arith.constant 1 : i32
    %2 = tpu.dynamic_rotate %1 by %c1_i32 dim 1 : vector<1x128xf32>, i32 -> vector<1x128xf32>
    %3 = arith.mulf %1, %2 : vector<1x128xf32>
    %c2_i32 = arith.constant 2 : i32
    %4 = tpu.dynamic_rotate %3 by %c2_i32 dim 1 : vector<1x128xf32>, i32 -> vector<1x128xf32>
    %5 = arith.mulf %3, %4 : vector<1x128xf32>
    %c4_i32 = arith.constant 4 : i32
    %6 = tpu.dynamic_rotate %5 by %c4_i32 dim 1 : vector<1x128xf32>, i32 -> vector<1x128xf32>
    %7 = arith.mulf %5, %6 : vector<1x128xf32>
    %c8_i32 = arith.constant 8 : i32
    %8 = tpu.dynamic_rotate %7 by %c8_i32 dim 1 : vector<1x128xf32>, i32 -> vector<1x128xf32>
    %9 = arith.mulf %7, %8 : vector<1x128xf32>
    %c0_1 = arith.constant 0 : index
    %c0_2 = arith.constant 0 : index
    %10 = vector.load %arg1[%c0_1, %c0_2] : memref<1x128xf32, #tpu.memory_space<vmem>>, vector<1x128xf32>
    tpu.vector_store %arg1[%c0_1, %c0_2], %9 {strides = array<i32>} : memref<1x128xf32, #tpu.memory_space<vmem>>, vector<1x128xf32>,
    return
  }
}

</mosaic_0001>

<bundles_post_ra>
// kernel: quantum_latent_compressor.1
= control target key start
LH: loop header
LB: loop body
LE: loop exit
PB: predicated region body
PF: predicated region fallthrough
CT: control target
= control target key end

     0   :  { %v151_v12 = vmov 683565275   ;;  %v152_v14 = vmov 2475754826   ;;  %v153_v16 = vmov 2131351028   ;;  %s198_s0 = inlined_call_operand.vmem [shape: f32[1,128], index: 0, kind: input, shape index: {}]   ;;  %s199_s1 = inlined_call_operand.vmem [shape: f32[1,128], index: 1, kind: output, shape index: {}]  }
   0x1   :  { %v174_v0 = vld [vmem:[%s198_s0] sm:$0x1]  ;;  %v154_v18 = vmov 2102212464   ;;  %v155_v20 = vmov 920167782  }
   0x2   :  { %v12_v1 = vand.u32 2139095040, %v174_v0  ;;  %v9_v3 = vand.u32 2147483647, %v174_v0  ;;  %v156_v27 = vmov 1326507024   ;;  %vm11_vm7 = vcmp.lt.s32.totalorder %v174_v0, 0 }
   0x3   :  { %vm101_vm12 = vweird.f32 %v174_v0  ;;  %s157_s0 = smov 1   ;;  %s158_s8 = smov 2  }
   0x4   :  { %v13_v2 = vshrl.u32 %v12_v1, 23  ;;  %v16_v6 = vand.u32 8388607, %v9_v3  ;;  %vm10_vm8 = vcmp.le.f32.partialorder %v9_v3, 0.7853982  ;;  %s159_s9 = smov 4  }
   0x5   :  { %s160_s10 = smov 8  }
   0x6   :  { %v129_v4 = vadd.s32 4294967169, %v13_v2  ;;  %v17_v9 = vor.u32 8388608, %v16_v6 }
   0x8   :  { %v19_v5 = vadd.s32 1, %v129_v4  ;;  %v57_v29 = vshll.u32 %v17_v9, 8 }
   0xa   :  { %vm20_vm0 = vcmp.gt.s32.totalorder %v19_v5, 0 }
   0xb   :  { %v21_v7 = vsel %vm20_vm0, %v19_v5, 0 }
   0xc   :  { %v23_v8 = vand.u32 31, %v21_v7  ;;  %v22_v10 = vshrl.u32 %v21_v7, 5 }
   0xe   :  { %v24_v11 = vsub.s32 32, %v23_v8  ;;  %v26_v13 = vshll.u32 %v151_v12, %v23_v8  ;;  %v29_v15 = vshll.u32 %v152_v14, %v23_v8  ;;  %v32_v17 = vshll.u32 %v153_v16, %v23_v8 }
   0xf   :  { %v35_v19 = vshll.u32 %v154_v18, %v23_v8  ;;  %v38_v21 = vshll.u32 %v155_v20, %v23_v8  ;;  %vm41_vm1 = vcmp.lt.s32.totalorder %v22_v10, 1  ;;  %vm44_vm2 = vcmp.lt.s32.totalorder %v22_v10, 4 }
  0x10   :  { %v25_v22 = vshrl.u32 %v151_v12, %v24_v11  ;;  %v27_v23 = vshrl.u32 %v152_v14, %v24_v11  ;;  %v30_v24 = vshrl.u32 %v153_v16, %v24_v11  ;;  %v33_v25 = vshrl.u32 %v154_v18, %v24_v11 }
  0x11   :  { %v36_v26 = vshrl.u32 %v155_v20, %v24_v11  ;;  %v39_v28 = vshrl.u32 %v156_v27, %v24_v11  ;;  %vm42_vm3 = vcmp.lt.s32.totalorder %v22_v10, 2  ;;  %vm43_vm4 = vcmp.lt.s32.totalorder %v22_v10, 3 }
  0x12   :  { %v28_v30 = vor.u32 %v27_v23, %v26_v13  ;;  %v31_v31 = vor.u32 %v30_v24, %v29_v15  ;;  %v34_v32 = vor.u32 %v33_v25, %v32_v17 }
  0x13   :  { %v37_v33 = vor.u32 %v36_v26, %v35_v19  ;;  %v40_v34 = vor.u32 %v39_v28, %v38_v21 }
  0x14   :  { %v45_v35 = vsel %vm41_vm1, %v25_v22, %v28_v30  ;;  %v46_v36 = vsel %vm44_vm2, %v34_v32, 2102212464  ;;  %v49_v37 = vsel %vm41_vm1, %v28_v30, %v31_v31  ;;  %v53_v38 = vsel %vm41_vm1, %v31_v31, %v34_v32 }
  0x15   :  { %v47_v39 = vsel %vm43_vm4, %v31_v31, %v46_v36  ;;  %v50_v40 = vsel %vm44_vm2, %v37_v33, 920167782  ;;  %v54_v41 = vsel %vm44_vm2, %v40_v34, 1326507024 }
  0x16   :  { %v51_v42 = vsel %vm43_vm4, %v34_v32, %v50_v40  ;;  %v55_v43 = vsel %vm43_vm4, %v37_v33, %v54_v41  ;;  %v48_v44 = vsel %vm42_vm3, %v45_v35, %v47_v39 }
  0x17   :  { %v52_v45 = vsel %vm42_vm3, %v49_v37, %v51_v42  ;;  %v56_v46 = vsel %vm42_vm3, %v53_v38, %v55_v43  ;;  %v64_v51 = vmul.u32 %v57_v29, %v48_v44 }
  0x18   :  { %v180_v47 = vmul.u32.u64.low %v57_v29, %v56_v46  ;;  %v181_v48 = vmul.u32.u64.high %v57_v29, %v56_v46, %v180_v47  ;;  %v183_v49 = vmul.u32.u64.low %v57_v29, %v52_v45  ;;  %v184_v50 = vmul.u32.u64.high %v57_v29, %v52_v45, %v183_v49 }
  0x1a   :  { %vm66_vm5 = vc.u32 %v181_v48, %v183_v49  ;;  %v67_v52 = vadd.s32 1, %v184_v50  ;;  %v65_v63 = vadd.s32 %v183_v49, %v181_v48 }
  0x1c   :  { %v68_v53 = vsel %vm66_vm5, %v67_v52, %v184_v50 }
  0x1d   :  { %v69_v54 = vadd.s32 %v68_v53, %v64_v51 }
  0x1f   :  { %v70_v55 = vadd.s32 536870912, %v69_v54 }
  0x21   :  { %v71_v56 = vshrl.u32 %v70_v55, 30 }
  0x23   :  { %v72_v57 = vshll.u32 %v71_v56, 30  ;;  %v95_v15 = vsub.s32 4, %v71_v56 }
  0x25   :  { %v73_v58 = vsub.s32 %v69_v54, %v72_v57  ;;  %v96_v18 = vsel %vm11_vm7, %v95_v15, %v71_v56 }
  0x26   :  { %v98_v19 = vsel %vm10_vm8, 0, %v96_v18 }
  0x27   :  { %v75_v59 = vsub.s32 0, %v73_v58  ;;  %v102_v20 = vand.u32 3, %v98_v19 }
  0x29   :  { %v130_v60 = vmin.u32 %v75_v59, %v73_v58  ;;  %vm107_vm9 = vcmp.eq.s32.totalorder %v102_v20, 2  ;;  %vm104_vm10 = vcmp.eq.s32.totalorder %v102_v20, 0  ;;  %vm103_vm11 = vcmp.lt.s32.totalorder %v102_v20, 2 }
  0x2b   :  { %v77_v61 = vclz %v130_v60 }
  0x2d   :  { %v131_v62 = vadd.s32 4294967294, %v77_v61 }
  0x2f   :  { %vm132_vm6 = vcmp.lt.s32.totalorder %v131_v62, 0 }
  0x30   :  { %v80_v1 = vsel %vm132_vm6, 0, %v131_v62 }
  0x31   :  { %v81_v2 = vsub.s32 32, %v80_v1  ;;  %v82_v4 = vshll.u32 %v73_v58, %v80_v1  ;;  %v85_v5 = vsub.s32 4294967266, %v80_v1 }
  0x33   :  { %v83_v6 = vshrl.u32 %v65_v63, %v81_v2  ;;  %v86_v7 = vadd.s32 127, %v85_v5 }
  0x35   :  { %v84_v8 = vor.u32 %v83_v6, %v82_v4  ;;  %v87_v9 = vshll.u32 %v86_v7, 23 }
  0x37   :  { %v88_v10 = vor.u32 4788187, %v87_v9  ;;  %v91_v11 = vcvt.s32.f32 %v84_v8 }
  0x39   :  { %v89_v12 = vand.u32 2147483647, %v88_v10 }
  0x3b   :  { %v92_v13 = vmul.f32 %v91_v11, %v89_v12 }
  0x3d   :  { %v93_v14 = vxor.u32 2147483648, %v92_v13 }
  0x3f   :  { %v94_v16 = vsel %vm11_vm7, %v93_v14, %v92_v13 }
  0x40   :  { %v97_v17 = vsel %vm10_vm8, %v174_v0, %v94_v16 }
  0x41   :  { %147 = vcosq.f32 %v97_v17 }
  0x42   :  { %149 = vsinq.f32 %v97_v17 }
  0x4b   :  { %v148_v21 = vpop.eup %147 }
  0x4c   :  { %v150_v22 = vpop.eup %149  ;;  %v108_v23 = vxor.u32 2147483648, %v148_v21 }
  0x4d   :  { %v105_v24 = vxor.u32 2147483648, %v150_v22 }
  0x4e   :  { %v109_v3 = vsel %vm107_vm9, %v108_v23, %v150_v22 }
  0x4f   :  { %v106_v25 = vsel %vm104_vm10, %v148_v21, %v105_v24 }
  0x50   :  { %v110_v26 = vsel %vm103_vm11, %v106_v25, %v109_v3 }
  0x51   :  { %v111_v27 = vsel %vm101_vm12, nan, %v110_v26 }
  0x52   :  { %112 = vrot.lane.b32.xlu0 %v111_v27, %s157_s0 }
  0xc4   :  { %v113_v28 = vpop.permute.xlu0 %112 }
  0xc5   :  { %v114_v29 = vmul.f32 %v113_v28, %v111_v27 }
  0xc7   :  { %115 = vrot.lane.b32.xlu0 %v114_v29, %s158_s8 }
 0x139   :  { %v116_v30 = vpop.permute.xlu0 %115 }
 0x13a   :  { %v117_v31 = vmul.f32 %v116_v30, %v114_v29 }
 0x13c   :  { %118 = vrot.lane.b32.xlu1 %v117_v31, %s159_s9 }
 0x1ae   :  { %v119_v32 = vpop.permute.xlu1 %118 }
 0x1af   :  { %v120_v33 = vmul.f32 %v119_v32, %v117_v31 }
 0x1b1   :  { %121 = vrot.lane.b32.xlu1 %v120_v33, %s160_s10 }
 0x223   :  { %v122_v34 = vpop.permute.xlu1 %121 }
 0x224   :  { %v123_v0 = vmul.f32 %v122_v34, %v120_v33 }
 0x226   :  { %124 = vst [vmem:[%s199_s1] sm:$0x1] %v123_v0 }

</bundles_post_ra>
